<compile_context>
chip_gen: v5e
topology: v5e:2x2
jax: 0.10.0
libtpu: 0.0.40
codegen_flags: <defaults>
</compile_context>

<pallas_src>
import numpy as np
import jax
import jax.numpy as jnp
from jax.experimental import pallas as pl
from jax.experimental.pallas import tpu as pltpu


def _round_up(x, m):
    return (x + m - 1) // m * m


def _affine_apply_kernel(coords_ref, params_ref, out_ref):
    # coords_ref / out_ref: (TB, TL) f32, lane-dense [x0, y0, x1, y1, ...]
    # params_ref:           (TB, 8)  f32, columns [m, tx, ty, 0, 0, 0, 0, 0]
    lane = jax.lax.broadcasted_iota(jnp.int32, out_ref.shape, dimension=1)
    is_y = (lane & 1) == 1                      # valid: block lane start is even
    m = params_ref[:, 0:1]                      # (TB, 1)
    tx = params_ref[:, 1:2]
    ty = params_ref[:, 2:3]
    t = jnp.where(is_y, ty, tx)                 # VPU filler, hidden under mem-bound
    out_ref[...] = coords_ref[...] * m + t      # single streaming FMA


def get_affine_transform(coords, center, scale, output_size, shift, inv,
                         *, lane_tile=None, batch_tile=256):
    """Pallas port of GetAffineTransform.forward.

    coords: (B, N, 2) f32, center/scale: (B, 2) f32,
    output_size/shift: (2,) f32, inv: python int / 0-d int.
    Returns transformed coords, shape (B, N, 2) f32.
    Precondition: scale[:, 0] != 0 and output_size[0] != 0.
    """
    coords = jnp.asarray(coords, jnp.float32)
    center = jnp.asarray(center, jnp.float32)
    scale = jnp.asarray(scale, jnp.float32)
    output_size = jnp.asarray(output_size, jnp.float32)
    shift = jnp.asarray(shift, jnp.float32)

    B, N, _ = coords.shape
    L = 2 * N

    # ---- per-generation tile selection (lane-dim first, multiples of 128) ----
    kind = jax.devices()[0].device_kind.lower()
    is_v7 = "v7" in kind
    if lane_tile is None:
        if is_v7:
            lane_tile = 4096          # ~4 MiB blocks: amortize step overhead vs 3.2 TB/s
        elif "v6" in kind:
            lane_tile = 2048          # ~2 MiB blocks: ~86% of roofline, fewer steps
        else:
            lane_tile = 1024          # v5e / unknown: 1 MiB blocks

    TL = min(lane_tile, _round_up(L, 128))
    TB = min(batch_tile, _round_up(B, 8))

    # v7x megacore: avoid a single-block grid for non-trivial sizes (2 TCs).
    if is_v7 and pl.cdiv(B, TB) * pl.cdiv(L, TL) == 1 and TB * TL * 4 >= (2 << 20):
        TL = _round_up((TL + 1) // 2, 128)

    grid = (pl.cdiv(B, TB), pl.cdiv(L, TL))

    # ---- per-batch affine params (rot = 0 => per-axis scale + translation) ----
    # Tiny O(B) math, hoisted out of the streaming kernel.
    src_w = scale[:, 0]
    dst_w, dst_h = output_size[0], output_size[1]
    a_x = center[:, 0] + scale[:, 0] * shift[0]          # src anchor
    a_y = center[:, 1] + scale[:, 1] * shift[1]
    A_x, A_y = 0.5 * dst_w, 0.5 * dst_h                  # dst anchor

    s_fwd = dst_w / src_w
    tx_fwd = A_x - s_fwd * a_x
    ty_fwd = A_y - s_fwd * a_y
    s_inv = src_w / dst_w
    tx_inv = a_x - s_inv * A_x
    ty_inv = a_y - s_inv * A_y

    use_inv = jnp.asarray(inv, jnp.int32) != 0
    m = jnp.where(use_inv, s_inv, s_fwd)                 # (B,)
    tx = jnp.where(use_inv, tx_inv, tx_fwd)
    ty = jnp.where(use_inv, ty_inv, ty_fwd)

    # Pack params into one (B_pad, 8) slab (single small per-tile DMA).
    B_pad = _round_up(B, TB)
    params = jnp.stack([m, tx, ty], axis=1)              # (B, 3)
    params = jnp.pad(params, ((0, B_pad - B), (0, 8 - 3)))

    # ---- lane-dense view; coords itself is NOT padded (ragged grid masks tails) ----
    coords2 = coords.reshape(B, L)                       # contiguous -> free view

    flops = 2 * B * L
    bytes_accessed = 8 * B * L + 32 * B_pad              # coords in+out + params

    out = pl.pallas_call(
        _affine_apply_kernel,
        out_shape=jax.ShapeDtypeStruct((B, L), jnp.float32),
        grid=grid,
        in_specs=[
            pl.BlockSpec((TB, TL), lambda i, j: (i, j)),   # coords slab (ragged ok)
            pl.BlockSpec((TB, 8), lambda i, j: (i, 0)),    # packed params
        ],
        out_specs=pl.BlockSpec((TB, TL), lambda i, j: (i, j)),
        compiler_params=pltpu.CompilerParams(
            dimension_semantics=("parallel", "parallel"),
            vmem_limit_bytes=32 * 1024 * 1024),            # explicit: safe on v5e's 16 MiB default
        cost_estimate=pl.CostEstimate(
            flops=flops, transcendentals=0, bytes_accessed=bytes_accessed),
    )(coords2, params)

    return out.reshape(B, N, 2)


# -------------------- pure numpy reference (3-point solve) --------------------
def _ref_one(coords, center, scale, output_size, shift, inv):
    coords = coords.astype(np.float64)
    center = center.astype(np.float64)
    scale = scale.astype(np.float64)
    output_size = output_size.astype(np.float64)
    shift = shift.astype(np.float64)

    src_w = scale[0]
    dst_w, dst_h = output_size[0], output_size[1]
    src_dir = np.array([0.0, -0.5 * src_w])
    dst_dir = np.array([0.0, -0.5 * dst_w])

    def third(a, b):
        d = a - b
        return b + np.array([-d[1], d[0]])

    src = np.zeros((3, 2))
    dst = np.zeros((3, 2))
    src[0] = center + scale * shift
    src[1] = center + src_dir + scale * shift
    src[2] = third(src[0], src[1])
    dst[0] = np.array([0.5 * dst_w, 0.5 * dst_h])
    dst[1] = dst[0] + dst_dir
    dst[2] = third(dst[0], dst[1])

    if inv:
        src, dst = dst, src
    A = np.concatenate([src, np.ones((3, 1))], axis=1)       # (3, 3)
    M = np.linalg.solve(A, dst).T                            # (2, 3)
    pts = np.concatenate([coords, np.ones((coords.shape[0], 1))], axis=1)
    return (pts @ M.T).astype(np.float32)


def _ref_batch(coords, center, scale, output_size, shift, inv):
    return np.stack([
        _ref_one(np.asarray(coords[b]), np.asarray(center[b]),
                 np.asarray(scale[b]), np.asarray(output_size),
                 np.asarray(shift), inv)
        for b in range(coords.shape[0])
    ])


if __name__ == "__main__":
    key = jax.random.PRNGKey(0)
    k1, k2, k3, k4, k5, k6 = jax.random.split(key, 6)

    # Small case (typical transform_preds usage: heatmap -> image, inv = 1).
    B, N = 2, 8
    coords = jax.random.uniform(k1, (B, N, 2), jnp.float32, 0.0, 64.0)
    center = jax.random.uniform(k2, (B, 2), jnp.float32, 100.0, 300.0)
    scale = jax.random.uniform(k3, (B, 2), jnp.float32, 150.0, 400.0)
    output_size = jnp.array([64.0, 64.0], jnp.float32)
    shift = jnp.array([0.0, 0.0], jnp.float32)

    for inv in (1, 0):
        out = jax.block_until_ready(
            get_affine_transform(coords, center, scale, output_size, shift, inv))
        ref = _ref_batch(np.asarray(coords), np.asarray(center),
                         np.asarray(scale), np.asarray(output_size),
                         np.asarray(shift), inv)
        np.testing.assert_allclose(np.asarray(out), ref, rtol=1e-4, atol=1e-3)

    # Non-aligned case (ragged lane + batch tiles) with nonzero shift.
    B2, N2 = 3, 100
    coords2 = jax.random.uniform(k4, (B2, N2, 2), jnp.float32, 0.0, 96.0)
    center2 = jax.random.uniform(k5, (B2, 2), jnp.float32, 50.0, 500.0)
    scale2 = jax.random.uniform(k6, (B2, 2), jnp.float32, 100.0, 600.0)
    shift2 = jnp.array([0.05, 0.1], jnp.float32)
    out2 = jax.block_until_ready(
        get_affine_transform(coords2, center2, scale2, output_size, shift2, 1))
    ref2 = _ref_batch(np.asarray(coords2), np.asarray(center2),
                      np.asarray(scale2), np.asarray(output_size),
                      np.asarray(shift2), 1)
    np.testing.assert_allclose(np.asarray(out2), ref2, rtol=1e-4, atol=1e-3)

    print("KERNEL_OK")
</pallas_src>

<mosaic_0001>
module attributes {stable_mosaic.version = 11 : i64} {
  func.func @_affine_apply_kernel(%arg0: i32, %arg1: i32, %arg2: memref<8x128xf32, #tpu.memory_space<vmem>>, %arg3: memref<8x8xf32, #tpu.memory_space<vmem>>, %arg4: memref<8x128xf32, #tpu.memory_space<vmem>>) attributes {dimension_semantics = [#tpu.dimension_semantics<parallel>, #tpu.dimension_semantics<parallel>], iteration_bounds = array<i64: 1, 1>, scalar_prefetch = 0 : i64, scratch_operands = 0 : i64, tpu.core_type = #tpu.core_type<tc>, window_params = [{transform_indices = @transform_0, window_bounds = array<i64: 8, 128>}, {transform_indices = @transform_1, window_bounds = array<i64: 8, 8>}, {transform_indices = @transform_2, window_bounds = array<i64: 8, 128>}]} {
    %0 = tpu.iota {dimensions = array<i32: 1>} : vector<8x128xi32>
    %c1_i32 = arith.constant 1 : i32
    %1 = vector.broadcast %c1_i32 : i32 to vector<8x128xi32>
    %2 = arith.andi %0, %1 : vector<8x128xi32>
    %c1_i32_0 = arith.constant 1 : i32
    %3 = vector.broadcast %c1_i32_0 : i32 to vector<8x128xi32>
    %4 = arith.cmpi eq, %2, %3 : vector<8x128xi32>
    %c0 = arith.constant 0 : index
    %c0_1 = arith.constant 0 : index
    %5 = vector.load %arg3[%c0, %c0_1] : memref<8x8xf32, #tpu.memory_space<vmem>>, vector<8x1xf32>
    %c0_2 = arith.constant 0 : index
    %c1 = arith.constant 1 : index
    %6 = vector.load %arg3[%c0_2, %c1] : memref<8x8xf32, #tpu.memory_space<vmem>>, vector<8x1xf32>
    %c0_3 = arith.constant 0 : index
    %c2 = arith.constant 2 : index
    %7 = vector.load %arg3[%c0_3, %c2] : memref<8x8xf32, #tpu.memory_space<vmem>>, vector<8x1xf32>
    %8 = vector.shape_cast %7 : vector<8x1xf32> to vector<8x1xf32>
    %9 = vector.broadcast %8 : vector<8x1xf32> to vector<8x128xf32>
    %10 = vector.shape_cast %6 : vector<8x1xf32> to vector<8x1xf32>
    %11 = vector.broadcast %10 : vector<8x1xf32> to vector<8x128xf32>
    %12 = arith.select %4, %9, %11 : vector<8x128xi1>, vector<8x128xf32>
    %c0_4 = arith.constant 0 : index
    %c0_5 = arith.constant 0 : index
    %13 = vector.load %arg2[%c0_4, %c0_5] : memref<8x128xf32, #tpu.memory_space<vmem>>, vector<8x128xf32>
    %14 = vector.broadcast %5 : vector<8x1xf32> to vector<8x128xf32>
    %15 = arith.mulf %13, %14 : vector<8x128xf32>
    %16 = arith.addf %15, %12 : vector<8x128xf32>
    %c0_6 = arith.constant 0 : index
    %c0_7 = arith.constant 0 : index
    %17 = vector.load %arg4[%c0_6, %c0_7] : memref<8x128xf32, #tpu.memory_space<vmem>>, vector<8x128xf32>
    tpu.vector_store %arg4[%c0_6, %c0_7], %16 {strides = array<i32>} : memref<8x128xf32, #tpu.memory_space<vmem>>, vector<8x128xf32>,
    return
  }
  func.func @transform_0(%arg0: i32, %arg1: i32) -> (i32, i32) {
    %c0_i32 = arith.constant 0 : i32
    return %arg0, %arg1 : i32, i32
  }
  func.func @transform_1(%arg0: i32, %arg1: i32) -> (i32, i32) {
    %c0_i32 = arith.constant 0 : i32
    %c0_i32_0 = arith.constant 0 : i32
    return %arg0, %c0_i32 : i32, i32
  }
  func.func @transform_2(%arg0: i32, %arg1: i32) -> (i32, i32) {
    %c0_i32 = arith.constant 0 : i32
    return %arg0, %arg1 : i32, i32
  }
}

</mosaic_0001>

<bundles_post_ra>
// kernel: tpu_custom_call.1
= control target key start
LH: loop header
LB: loop body
LE: loop exit
PB: predicated region body
PF: predicated region fallthrough
CT: control target
= control target key end

     0   :  { %7 = vsyncpa [#allocation3], 0  ;;  %s213_s0 = inlined_call_operand.hbm [shape: f32[2,16], index: 0, kind: input, shape index: {}]   ;;  %s214_s1 = inlined_call_operand.hbm [shape: f32[8,8], index: 1, kind: input, shape index: {}]   ;;  %s215_s2 = inlined_call_operand.hbm [shape: f32[2,16], index: 2, kind: output, shape index: {}]  }
   0x1   :  { %8 = vsyncpa [#allocation6], 0 }
   0x2   :  { %9 = vsyncpa [#allocation4], 0 }
   0x3   :  { %13 = vsyncadd [#allocation3], 96  ;;  %s14_s11 = sshll.u32 %s213_s0, 4  ;;  %s175_s12 = smov [#allocation2]   ;;  %s15_s11 = int_to_ptr.hbm [resolvable:$true] %s14_s11 }
   0x4   :  { %s16_s13 = sshll.u32 %s175_s12, 4  ;;  %s28_s16 = sshll.u32 %s214_s1, 4  ;;  %s17_s13 = int_to_ptr.vmem [resolvable:$true] %s16_s13  ;;  %s29_s16 = int_to_ptr.hbm [resolvable:$true] %s28_s16 }
   0x5   :  { %s176_s17 = smov 32   ;;  %s177_s18 = smov 2  }
   0x6   :  { %22 = dma.hbm_to_vmem [thread:$0]  %s15_s11, 32, %s17_s13, [#allocation3], %s176_s17, %s176_s17, %s177_s18  }
   0x7   :  { %s178_s19 = smov [#allocation5]  }
   0x8   :  { %s30_s20 = sshll.u32 %s178_s19, 4  ;;  %s31_s20 = int_to_ptr.vmem [resolvable:$true] %s30_s20 }
   0x9   :  { %33 = dma.hbm_to_vmem [thread:$0]  %s29_s16, 128, %s31_s20, [#allocation6]  }
   0xa   :  { %169 = dma.done.wait [#allocation3], 128  }
   0xb   :  { %170 = vsyncadd [#allocation3], 4294967168 }
   0xc   :  { %171 = dma.done.wait [#allocation6], 128  }
   0xd   :  { %172 = vsyncadd [#allocation6], 4294967168  ;;  %v179_v0 = vmov 0   ;;  %v180_v1 = vmov 1   ;;  %v46_v2 = vld [vmem:[#allocation5] sm:$0xff]  ;;  %v181_v3 = vmov 2   ;;  %v42_v4 = vlaneseq }
   0xe   :  { %93 = vset.pattern.permute.xlu0 %v179_v0  ;;  %95 = vset.pattern.permute.xlu1 %v180_v1  ;;  %v57_v8 = vld [vmem:[#allocation2] sm:$0xff] }
   0xf   :  { %59 = vperm.xlu0 %93, %v46_v2   ;;  %53 = vperm.xlu1 %95, %v46_v2   ;;  %v43_v5 = vand.u32 127, %v42_v4 }
  0x11   :  { %v44_v7 = vand.u32 1, %v43_v5 }
  0x13   :  { %vm45_vm0 = vcmp.eq.s32.totalorder %v44_v7, 1 }
  0x17   :  { %94 = vset.pattern.permute.xlu0 %v181_v3 }
  0x18   :  { %49 = vperm.xlu0 %94, %v46_v2  }
  0x20   :  { %96 = vset.pattern.permute.xlu0 %v179_v0 }
  0x81   :  { %v60_v6 = vpop.permute.xlu0 %59  ;;  %v54_v9 = vpop.permute.xlu1 %53 }
  0x82   :  { %v62_v10 = vmul.f32 %v60_v6, %v57_v8 }
  0x8a   :  { %v50_v11 = vpop.permute.xlu0 %49 }
  0x8b   :  { %v56_v12 = vsel %vm45_vm0, %v50_v11, %v54_v9 }
  0x8c   :  { %v63_v13 = vadd.f32 %v62_v10, %v56_v12 }
  0x8e   :  { %64 = vst [vmem:[#allocation7] sm:$0xff] %v63_v13 }
  0x8f   :  { %68 = vsyncadd [#allocation4], 96  ;;  %s71_s21 = sshll.u32 %s215_s2, 4  ;;  %s182_s22 = smov [#allocation7]   ;;  %s72_s21 = int_to_ptr.hbm [resolvable:$true] %s71_s21 }
  0x90   :  { %s69_s23 = sshll.u32 %s182_s22, 4  ;;  %s70_s23 = int_to_ptr.vmem [resolvable:$true] %s69_s23 }
  0x91   :  { %77 = dma.vmem_to_hbm [thread:$0]  %s70_s23, 32, %s72_s21, [#allocation4], %s176_s17, %s176_s17, %s177_s18  }
  0x92   :  { %173 = dma.done.wait [#allocation4], 128  }
  0x93   :  { %174 = vsyncadd [#allocation4], 4294967168 }
  0x94   :  { %82 = vsyncpa [#allocation3], 1 }
  0x95   :  { %83 = vsyncpa [#allocation6], 1 }
  0x96   :  { %84 = vsyncpa [#allocation4], 1 }

</bundles_post_ra>
